<compile_context>
chip_gen: v7x
topology: tpu7x:2x2x1
jax: 0.10.0
libtpu: 0.0.40
codegen_flags: <defaults>
</compile_context>

<pallas_src>
import functools
import math

import jax
import jax.numpy as jnp
from jax.experimental import pallas as pl
from jax.experimental.pallas import tpu as pltpu


def _round_up(x, m):
    return (x + m - 1) // m * m


def _mlp_softmax_kernel(x_ref, w1_ref, b1_ref, w2_ref, b2_ref, w3_ref, b3_ref,
                        o_ref, *, n_valid):
    # x_ref: (TM, K); w*: (in, out); b*: (1, out); o_ref: (TM, N_pad). All VMEM.
    h = jnp.dot(x_ref[...], w1_ref[...], preferred_element_type=jnp.float32)
    h = jnp.maximum(h + b1_ref[...], 0.0)
    h = jnp.dot(h, w2_ref[...], preferred_element_type=jnp.float32)
    h = jnp.maximum(h + b2_ref[...], 0.0)
    logits = jnp.dot(h, w3_ref[...], preferred_element_type=jnp.float32)
    logits = logits + b3_ref[...]

    # Mask the lanes that only exist for lane-dense padding, then stable softmax.
    lane = jax.lax.broadcasted_iota(jnp.int32, logits.shape, dimension=1)
    logits = jnp.where(lane < n_valid, logits, -jnp.inf)
    m = jnp.max(logits, axis=-1, keepdims=True)
    e = jnp.exp(logits - m)
    s = jnp.sum(e, axis=-1, keepdims=True)
    o_ref[...] = (e / s).astype(o_ref.dtype)


def prepare_params(w1_pt, b1_pt, w2_pt, b2_pt, w3_pt, b3_pt, num_classes):
    """One-time parameter prep (outside the per-call hot path).

    Takes PyTorch-layout (out_features, in_features) weights and returns
    (in, out) weights, with fc3 padded lane-dense to a multiple of 128.
    """
    n_pad = _round_up(max(num_classes, 1), 128)
    w1 = w1_pt.T                                    # (32, 64)
    w2 = w2_pt.T                                    # (64, 64)
    w3 = jnp.zeros((w3_pt.shape[1], n_pad), w3_pt.dtype)
    w3 = w3.at[:, :num_classes].set(w3_pt.T)        # (64, N_pad)
    b1 = b1_pt.reshape(1, -1)
    b2 = b2_pt.reshape(1, -1)
    b3 = jnp.zeros((1, n_pad), b3_pt.dtype).at[0, :num_classes].set(b3_pt)
    return (w1, b1, w2, b2, w3, b3)


def decoder_softmax_forward(x, params, num_classes):
    """x: (b, c, f) with c*f == 32; params from prepare_params."""
    w1, b1, w2, b2, w3, b3 = params
    b, c, f = x.shape
    k = c * f
    hid1 = w1.shape[1]
    hid2 = w2.shape[1]
    n_pad = w3.shape[1]

    x2d = x.reshape(b, k)

    # Pad batch to a sublane multiple and tile it with a 'parallel' grid.
    tm = min(256, _round_up(b, 8))
    b_pad = _round_up(b, tm)
    if b_pad != b:
        x2d = jnp.pad(x2d, ((0, b_pad - b), (0, 0)))
    grid = (b_pad // tm,)

    flops = 2 * b_pad * (k * hid1 + hid1 * hid2 + hid2 * n_pad)
    bytes_accessed = 4 * (b_pad * k + k * hid1 + hid1 * hid2 + hid2 * n_pad
                          + hid1 + hid2 + n_pad + b_pad * n_pad)

    out = pl.pallas_call(
        functools.partial(_mlp_softmax_kernel, n_valid=num_classes),
        out_shape=jax.ShapeDtypeStruct((b_pad, n_pad), x.dtype),
        grid_spec=pltpu.PrefetchScalarGridSpec(
            num_scalar_prefetch=0,
            grid=grid,
            in_specs=[
                pl.BlockSpec((tm, k), lambda i: (i, 0)),       # activations
                pl.BlockSpec((k, hid1), lambda i: (0, 0)),     # w1
                pl.BlockSpec((1, hid1), lambda i: (0, 0)),     # b1
                pl.BlockSpec((hid1, hid2), lambda i: (0, 0)),  # w2
                pl.BlockSpec((1, hid2), lambda i: (0, 0)),     # b2
                pl.BlockSpec((hid2, n_pad), lambda i: (0, 0)), # w3 (padded)
                pl.BlockSpec((1, n_pad), lambda i: (0, 0)),    # b3 (padded)
            ],
            out_specs=pl.BlockSpec((tm, n_pad), lambda i: (i, 0)),
        ),
        compiler_params=pltpu.CompilerParams(
            dimension_semantics=("parallel",),
        ),
        cost_estimate=pl.CostEstimate(
            flops=flops,
            transcendentals=b_pad * n_pad,
            bytes_accessed=bytes_accessed,
        ),
    )(x2d, w1, b1, w2, b2, w3, b3)

    return out[:b, :num_classes]


if __name__ == "__main__":
    # Shapes consistent with the module: c*f == 32 (fc1's in_features).
    B, C, F = 2, 4, 8
    NUM_CLASSES = 10
    K, H1, H2 = C * F, 64, 64

    key = jax.random.PRNGKey(0)
    kx, k1w, k1b, k2w, k2b, k3w, k3b = jax.random.split(key, 7)

    x = jax.random.normal(kx, (B, C, F), dtype=jnp.float32)

    def linear_init(kw, kb, fan_in, fan_out):
        # Deterministic nn.Linear-style init: U(-1/sqrt(fan_in), 1/sqrt(fan_in))
        bound = 1.0 / math.sqrt(fan_in)
        w = jax.random.uniform(kw, (fan_out, fan_in), minval=-bound,
                               maxval=bound, dtype=jnp.float32)
        bvec = jax.random.uniform(kb, (fan_out,), minval=-bound,
                                  maxval=bound, dtype=jnp.float32)
        return w, bvec

    w1_pt, b1_pt = linear_init(k1w, k1b, K, H1)
    w2_pt, b2_pt = linear_init(k2w, k2b, H1, H2)
    w3_pt, b3_pt = linear_init(k3w, k3b, H2, NUM_CLASSES)

    params = prepare_params(w1_pt, b1_pt, w2_pt, b2_pt, w3_pt, b3_pt, NUM_CLASSES)

    out = decoder_softmax_forward(x, params, NUM_CLASSES)
    out = jax.block_until_ready(out)

    # Plain-JAX reference of the PyTorch forward.
    x2d = x.reshape(B, -1)
    h = jnp.maximum(x2d @ w1_pt.T + b1_pt, 0.0)
    h = jnp.maximum(h @ w2_pt.T + b2_pt, 0.0)
    logits = h @ w3_pt.T + b3_pt
    ref = jax.nn.softmax(logits, axis=1)

    assert out.shape == (B, NUM_CLASSES)
    assert jnp.allclose(out, ref, atol=1e-5, rtol=1e-5), float(jnp.max(jnp.abs(out - ref)))
    assert jnp.allclose(jnp.sum(out, axis=1), 1.0, atol=1e-5)

    print("KERNEL_OK")
</pallas_src>

<mosaic_0001>
module attributes {stable_mosaic.version = 11 : i64} {
  func.func @_mlp_softmax_kernel(%arg0: i32, %arg1: memref<8x32xf32, #tpu.memory_space<vmem>>, %arg2: memref<32x64xf32, #tpu.memory_space<vmem>>, %arg3: memref<1x64xf32, #tpu.memory_space<vmem>>, %arg4: memref<64x64xf32, #tpu.memory_space<vmem>>, %arg5: memref<1x64xf32, #tpu.memory_space<vmem>>, %arg6: memref<64x128xf32, #tpu.memory_space<vmem>>, %arg7: memref<1x128xf32, #tpu.memory_space<vmem>>, %arg8: memref<8x128xf32, #tpu.memory_space<vmem>>) attributes {dimension_semantics = [#tpu.dimension_semantics<parallel>], iteration_bounds = array<i64: 1>, scalar_prefetch = 0 : i64, scratch_operands = 0 : i64, tpu.core_type = #tpu.core_type<tc>, window_params = [{transform_indices = @transform_0, window_bounds = array<i64: 8, 32>}, {pipeline_mode = #tpu.pipeline_mode<synchronous>, transform_indices = @transform_1, window_bounds = array<i64: 32, 64>}, {pipeline_mode = #tpu.pipeline_mode<synchronous>, transform_indices = @transform_2, window_bounds = array<i64: 1, 64>}, {pipeline_mode = #tpu.pipeline_mode<synchronous>, transform_indices = @transform_3, window_bounds = array<i64: 64, 64>}, {pipeline_mode = #tpu.pipeline_mode<synchronous>, transform_indices = @transform_4, window_bounds = array<i64: 1, 64>}, {pipeline_mode = #tpu.pipeline_mode<synchronous>, transform_indices = @transform_5, window_bounds = array<i64: 64, 128>}, {pipeline_mode = #tpu.pipeline_mode<synchronous>, transform_indices = @transform_6, window_bounds = array<i64: 1, 128>}, {transform_indices = @transform_7, window_bounds = array<i64: 8, 128>}]} {
    %c0 = arith.constant 0 : index
    %c0_0 = arith.constant 0 : index
    %0 = vector.load %arg1[%c0, %c0_0] : memref<8x32xf32, #tpu.memory_space<vmem>>, vector<8x32xf32>
    %c0_1 = arith.constant 0 : index
    %c0_2 = arith.constant 0 : index
    %1 = vector.load %arg2[%c0_1, %c0_2] : memref<32x64xf32, #tpu.memory_space<vmem>>, vector<32x64xf32>
    %cst = arith.constant dense<0.000000e+00> : vector<8x64xf32>
    %2 = tpu.matmul %0, %1, %cst {dimension_numbers = #tpu.dot_dimension_numbers<[1], [0], [0], [1], [0, 0, 1, 1], [], []>} : vector<8x32xf32>, vector<32x64xf32>, vector<8x64xf32> -> vector<8x64xf32>
    %c0_3 = arith.constant 0 : index
    %c0_4 = arith.constant 0 : index
    %3 = vector.load %arg3[%c0_3, %c0_4] : memref<1x64xf32, #tpu.memory_space<vmem>>, vector<1x64xf32>
    %4 = vector.broadcast %3 : vector<1x64xf32> to vector<8x64xf32>
    %5 = arith.addf %2, %4 : vector<8x64xf32>
    %cst_5 = arith.constant 0.000000e+00 : f32
    %6 = vector.broadcast %cst_5 : f32 to vector<8x64xf32>
    %7 = arith.maximumf %5, %6 : vector<8x64xf32>
    %c0_6 = arith.constant 0 : index
    %c0_7 = arith.constant 0 : index
    %8 = vector.load %arg4[%c0_6, %c0_7] : memref<64x64xf32, #tpu.memory_space<vmem>>, vector<64x64xf32>
    %cst_8 = arith.constant dense<0.000000e+00> : vector<8x64xf32>
    %9 = tpu.matmul %7, %8, %cst_8 {dimension_numbers = #tpu.dot_dimension_numbers<[1], [0], [0], [1], [0, 0, 1, 1], [], []>} : vector<8x64xf32>, vector<64x64xf32>, vector<8x64xf32> -> vector<8x64xf32>
    %c0_9 = arith.constant 0 : index
    %c0_10 = arith.constant 0 : index
    %10 = vector.load %arg5[%c0_9, %c0_10] : memref<1x64xf32, #tpu.memory_space<vmem>>, vector<1x64xf32>
    %11 = vector.broadcast %10 : vector<1x64xf32> to vector<8x64xf32>
    %12 = arith.addf %9, %11 : vector<8x64xf32>
    %cst_11 = arith.constant 0.000000e+00 : f32
    %13 = vector.broadcast %cst_11 : f32 to vector<8x64xf32>
    %14 = arith.maximumf %12, %13 : vector<8x64xf32>
    %c0_12 = arith.constant 0 : index
    %c0_13 = arith.constant 0 : index
    %15 = vector.load %arg6[%c0_12, %c0_13] : memref<64x128xf32, #tpu.memory_space<vmem>>, vector<64x128xf32>
    %cst_14 = arith.constant dense<0.000000e+00> : vector<8x128xf32>
    %16 = tpu.matmul %14, %15, %cst_14 {dimension_numbers = #tpu.dot_dimension_numbers<[1], [0], [0], [1], [0, 0, 1, 1], [], []>} : vector<8x64xf32>, vector<64x128xf32>, vector<8x128xf32> -> vector<8x128xf32>
    %c0_15 = arith.constant 0 : index
    %c0_16 = arith.constant 0 : index
    %17 = vector.load %arg7[%c0_15, %c0_16] : memref<1x128xf32, #tpu.memory_space<vmem>>, vector<1x128xf32>
    %18 = vector.broadcast %17 : vector<1x128xf32> to vector<8x128xf32>
    %19 = arith.addf %16, %18 : vector<8x128xf32>
    %20 = tpu.iota {dimensions = array<i32: 1>} : vector<8x128xi32>
    %c10_i32 = arith.constant 10 : i32
    %21 = vector.broadcast %c10_i32 : i32 to vector<8x128xi32>
    %22 = arith.cmpi slt, %20, %21 : vector<8x128xi32>
    %cst_17 = arith.constant 0xFF800000 : f32
    %23 = vector.broadcast %cst_17 : f32 to vector<8x128xf32>
    %24 = arith.select %22, %19, %23 : vector<8x128xi1>, vector<8x128xf32>
    %cst_18 = arith.constant dense<0xFF800000> : vector<8xf32>
    %25 = vector.multi_reduction <maximumf>, %24, %cst_18 [1] : vector<8x128xf32> to vector<8xf32>
    %26 = vector.shape_cast %25 : vector<8xf32> to vector<8x1xf32>
    %27 = vector.broadcast %26 : vector<8x1xf32> to vector<8x128xf32>
    %28 = arith.subf %24, %27 : vector<8x128xf32>
    %29 = math.exp %28 : vector<8x128xf32>
    %cst_19 = arith.constant dense<0.000000e+00> : vector<8xf32>
    %30 = vector.multi_reduction <add>, %29, %cst_19 [1] : vector<8x128xf32> to vector<8xf32>
    %31 = vector.shape_cast %30 : vector<8xf32> to vector<8x1xf32>
    %32 = vector.broadcast %31 : vector<8x1xf32> to vector<8x128xf32>
    %33 = arith.divf %29, %32 : vector<8x128xf32>
    %c0_20 = arith.constant 0 : index
    %c0_21 = arith.constant 0 : index
    %34 = vector.load %arg8[%c0_20, %c0_21] : memref<8x128xf32, #tpu.memory_space<vmem>>, vector<8x128xf32>
    tpu.vector_store %arg8[%c0_20, %c0_21], %33 {strides = array<i32>} : memref<8x128xf32, #tpu.memory_space<vmem>>, vector<8x128xf32>,
    return
  }
  func.func @transform_0(%arg0: i32) -> (i32, i32) {
    %c0_i32 = arith.constant 0 : i32
    %c0_i32_0 = arith.constant 0 : i32
    return %arg0, %c0_i32 : i32, i32
  }
  func.func @transform_1(%arg0: i32) -> (i32, i32) {
    %c0_i32 = arith.constant 0 : i32
    %c0_i32_0 = arith.constant 0 : i32
    %c0_i32_1 = arith.constant 0 : i32
    return %c0_i32, %c0_i32_0 : i32, i32
  }
  func.func @transform_2(%arg0: i32) -> (i32, i32) {
    %c0_i32 = arith.constant 0 : i32
    %c0_i32_0 = arith.constant 0 : i32
    %c0_i32_1 = arith.constant 0 : i32
    return %c0_i32, %c0_i32_0 : i32, i32
  }
  func.func @transform_3(%arg0: i32) -> (i32, i32) {
    %c0_i32 = arith.constant 0 : i32
    %c0_i32_0 = arith.constant 0 : i32
    %c0_i32_1 = arith.constant 0 : i32
    return %c0_i32, %c0_i32_0 : i32, i32
  }
  func.func @transform_4(%arg0: i32) -> (i32, i32) {
    %c0_i32 = arith.constant 0 : i32
    %c0_i32_0 = arith.constant 0 : i32
    %c0_i32_1 = arith.constant 0 : i32
    return %c0_i32, %c0_i32_0 : i32, i32
  }
  func.func @transform_5(%arg0: i32) -> (i32, i32) {
    %c0_i32 = arith.constant 0 : i32
    %c0_i32_0 = arith.constant 0 : i32
    %c0_i32_1 = arith.constant 0 : i32
    return %c0_i32, %c0_i32_0 : i32, i32
  }
  func.func @transform_6(%arg0: i32) -> (i32, i32) {
    %c0_i32 = arith.constant 0 : i32
    %c0_i32_0 = arith.constant 0 : i32
    %c0_i32_1 = arith.constant 0 : i32
    return %c0_i32, %c0_i32_0 : i32, i32
  }
  func.func @transform_7(%arg0: i32) -> (i32, i32) {
    %c0_i32 = arith.constant 0 : i32
    %c0_i32_0 = arith.constant 0 : i32
    return %arg0, %c0_i32 : i32, i32
  }
}

</mosaic_0001>

<bundles_post_ra>
// kernel: tpu_custom_call.1
= control target key start
LH: loop header
LB: loop body
LE: loop exit
PB: predicated region body
PF: predicated region fallthrough
CT: control target
= control target key end

     0   :  { %12 = vsyncpa [#allocation3], 0  ;;  %s747_s0 = inlined_call_operand.hbm [shape: f32[8,32], index: 0, kind: input, shape index: {}]   ;;  %s748_s1 = inlined_call_operand.hbm [shape: f32[32,64], index: 1, kind: input, shape index: {}]   ;;  %s749_s2 = inlined_call_operand.vmem [shape: f32[1,64], index: 2, kind: input, shape index: {}]   ;;  %s750_s3 = inlined_call_operand.hbm [shape: f32[64,64], index: 3, kind: input, shape index: {}]   ;;  %s751_s4 = inlined_call_operand.vmem [shape: f32[1,64], index: 4, kind: input, shape index: {}]   ;;  %s752_s5 = inlined_call_operand.hbm [shape: f32[64,128], index: 5, kind: input, shape index: {}]   ;;  %s753_s6 = inlined_call_operand.vmem [shape: f32[1,128], index: 6, kind: input, shape index: {}]   ;;  %s754_s7 = inlined_call_operand.hbm [shape: f32[8,128], index: 7, kind: output, shape index: {}]  }
   0x1   :  { %13 = vsyncpa [#allocation6], 0 }
   0x2   :  { %14 = vsyncpa [#allocation9], 0 }
   0x3   :  { %15 = vsyncpa [#allocation4], 0  ;;  %s616_s24 = smov [#allocation5]   ;;  %s498_s28 = scalar_lea.hbm %s748_s1, 512 }
   0x4   :  { %s31_s25 = sshll.u32 %s616_s24, 4  ;;  %p499_p0 = scmp.ne.s32.totalorder %s748_s1, %s498_s28  ;;  %s32_s25 = int_to_ptr.vmem [resolvable:$true] %s31_s25 }
   0x5   :  { %p502_p1 = scmp.lt.u32.totalorder %s498_s28, %s748_s1 }
   0x7   :  { %p504_p2 = pnand %p502_p1, %p499_p0 }
   0x9   :  { %507 = shalt.err (!%p504_p2)
}
   0xa   :  { %s508_s10 = scalar_lea.vmem %s32_s25, 512  ;;  %p513_p4 = scmp.lt.s32.totalorder %s32_s25, %s32_s25 }
   0xb   :  { %p509_p3 = scmp.ne.s32.totalorder %s32_s25, %s508_s10  ;;  %p514_p5 = scmp.lt.s32.totalorder %s508_s10, %s508_s10 }
   0xd   :  { %p515_p6 = por %p514_p5, %p513_p4 }
   0xf   :  { %p516_p7 = pnand %p515_p6, %p509_p3 }
  0x11   :  { %519 = shalt.err (!%p516_p7)
}
  0x12   :  { %s617_s11 = smov 128   ;;  %s618_s12 = smov 8  }
  0x13   :  { %37 = dma.hbm_to_vmem [thread:$0]  %s748_s1, 512, %s32_s25, [#allocation6], %s617_s11, %s617_s11, %s618_s12  }
  0x14   :  { %s619_s15 = smov [#allocation2]   ;;  %s620_s17 = smov [#allocation7]  }
  0x15   :  { %s22_s16 = sshll.u32 %s619_s15, 4  ;;  %s45_s18 = sshll.u32 %s620_s17, 4  ;;  %s23_s16 = int_to_ptr.vmem [resolvable:$true] %s22_s16  ;;  %s46_s18 = int_to_ptr.vmem [resolvable:$true] %s45_s18 }
  0x16   :  { %s520_s21 = scalar_lea.hbm %s747_s0, 128 }
  0x17   :  { %p521_p8 = scmp.ne.s32.totalorder %s747_s0, %s520_s21  ;;  %p524_p9 = scmp.lt.u32.totalorder %s520_s21, %s747_s0 }
  0x19   :  { %p526_p10 = pnand %p524_p9, %p521_p8 }
  0x1b   :  { %529 = shalt.err (!%p526_p10)
}
  0x1c   :  { %s530_s1 = scalar_lea.vmem %s23_s16, 128  ;;  %p535_p12 = scmp.lt.s32.totalorder %s23_s16, %s23_s16 }
  0x1d   :  { %p531_p11 = scmp.ne.s32.totalorder %s23_s16, %s530_s1  ;;  %p536_p13 = scmp.lt.s32.totalorder %s530_s1, %s530_s1 }
  0x1f   :  { %p537_p0 = por %p536_p13, %p535_p12 }
  0x21   :  { %p538_p1 = pnand %p537_p0, %p531_p11 }
  0x23   :  { %541 = shalt.err (!%p538_p1)
}
  0x24   :  { %25 = dma.hbm_to_vmem [thread:$0]  %s747_s0, 128, %s23_s16, [#allocation3]  }
  0x25   :  { %s542_s30 = scalar_lea.hbm %s750_s3, 1024 }
  0x26   :  { %p543_p2 = scmp.ne.s32.totalorder %s750_s3, %s542_s30  ;;  %p546_p3 = scmp.lt.u32.totalorder %s542_s30, %s750_s3 }
  0x28   :  { %p548_p4 = pnand %p546_p3, %p543_p2 }
  0x2a   :  { %551 = shalt.err (!%p548_p4)
}
  0x2b   :  { %s552_s14 = scalar_lea.vmem %s46_s18, 1024  ;;  %p557_p6 = scmp.lt.s32.totalorder %s46_s18, %s46_s18 }
  0x2c   :  { %p553_p5 = scmp.ne.s32.totalorder %s46_s18, %s552_s14  ;;  %p558_p7 = scmp.lt.s32.totalorder %s552_s14, %s552_s14 }
  0x2e   :  { %p559_p8 = por %p558_p7, %p557_p6 }
  0x30   :  { %p560_p9 = pnand %p559_p8, %p553_p5 }
  0x32   :  { %563 = shalt.err (!%p560_p9)
}
  0x33   :  { %51 = dma.hbm_to_vmem [thread:$0]  %s750_s3, 1024, %s46_s18, [#allocation6], %s617_s11, %s617_s11, %s618_s12  }
  0x34   :  { %s621_s16 = smov [#allocation8]   ;;  %s564_s21 = scalar_lea.hbm %s752_s5, 1024 }
  0x35   :  { %s59_s17 = sshll.u32 %s621_s16, 4  ;;  %p565_p10 = scmp.ne.s32.totalorder %s752_s5, %s564_s21  ;;  %s60_s17 = int_to_ptr.vmem [resolvable:$true] %s59_s17 }
  0x36   :  { %p568_p11 = scmp.lt.u32.totalorder %s564_s21, %s752_s5 }
  0x38   :  { %p570_p12 = pnand %p568_p11, %p565_p10 }
  0x3a   :  { %573 = shalt.err (!%p570_p12)
}
  0x3b   :  { %s574_s1 = scalar_lea.vmem %s60_s17, 1024  ;;  %p579_p0 = scmp.lt.s32.totalorder %s60_s17, %s60_s17 }
  0x3c   :  { %p575_p13 = scmp.ne.s32.totalorder %s60_s17, %s574_s1  ;;  %p580_p1 = scmp.lt.s32.totalorder %s574_s1, %s574_s1 }
  0x3e   :  { %p581_p2 = por %p580_p1, %p579_p0 }
  0x40   :  { %p582_p3 = pnand %p581_p2, %p575_p13 }
  0x42   :  { %585 = shalt.err (!%p582_p3)
}
  0x43   :  { %65 = dma.hbm_to_vmem [thread:$0]  %s752_s5, 1024, %s60_s17, [#allocation9], %s617_s11, %s617_s11, %s618_s12  }
  0x44   :  { %608 = dma.done.wait [#allocation3], 128  }
  0x45   :  { %609 = vsyncadd [#allocation3], 4294967168 }
  0x46   :  { %610 = dma.done.wait [#allocation6], 1536  }
  0x47   :  { %611 = vsyncadd [#allocation6], 4294965760 }
  0x48   :  { %612 = dma.done.wait [#allocation9], 1024  }
  0x49   :  { %613 = vsyncadd [#allocation9], 4294966272  ;;  %v622_v0 = vmov 0.0|0.0   ;;  %vm623_vm0 = vmmov 0   ;;  %v624_v1 = vmov 0.0   ;;  %v81_v2 = vld [vmem:[#allocation5] sm:$0xff]  ;;  %v345_v43 = vlaneseq }
  0x4a   :  { %454 = vmatprep.subr.bf16.mxu0 %v622_v0  ;;  %413 = vmatprep.mubr.msk.f32.mxu0 %vm623_vm0, %v624_v1  ;;  %v82_v3 = vld [vmem:[#allocation5 + $0x8] sm:$0xff]  ;;  %v83_v4 = vld [vmem:[#allocation5 + $0x10] sm:$0xff]  ;;  %v84_v6 = vld [vmem:[#allocation5 + $0x18] sm:$0xff]  ;;  %vm92_vm1 = vcmask 261120   ;;  %vm182_vm2 = vcmask 523264  }
  0x4b   :  { %460 = vmatprep.subr.bf16.mxu1 %v622_v0  ;;  %432 = vmatprep.mubr.msk.f32.mxu1 %vm623_vm0, %v624_v1  ;;  %v455_v5 = vpack.c.bf16 %v82_v3, %v81_v2  ;;  %v167_v7 = vld [vmem:[#allocation7] sm:$0xff]  ;;  %v168_v8 = vld [vmem:[#allocation7 + $0x8] sm:$0xff]  ;;  %v169_v9 = vld [vmem:[#allocation7 + $0x10] sm:$0xff]  ;;  %v458_v11 = vpack.c.bf16 %v84_v6, %v83_v4  ;;  %v346_v44 = vand.u32 127, %v345_v43 }
  0x4c   :  { %v170_v10 = vld [vmem:[#allocation7 + $0x18] sm:$0xff]  ;;  %v461_v12 = vpack.c.bf16 %v168_v8, %v167_v7  ;;  %v171_v14 = vld [vmem:[#allocation7 + $0x20] sm:$0xff]  ;;  %v172_v15 = vld [vmem:[#allocation7 + $0x28] sm:$0xff] }
  0x4d   :  { %456 = vmatpush3.bf16.msra.mxu0 %v455_v5  ;;  %v464_v13 = vpack.c.bf16 %v170_v10, %v169_v9  ;;  %v80_v16 = vld [vmem:[#allocation2] sm:$0xff]  ;;  %v467_v17 = vpack.c.bf16 %v172_v15, %v171_v14  ;;  %v173_v18 = vld [vmem:[#allocation7 + $0x30] sm:$0xff]  ;;  %v257_v21 = vld [vmem:[#allocation8] sm:$0xff]  ;;  %vm347_vm3 = vcmp.lt.s32.totalorder %v346_v44, 10 }
  0x4e   :  { %457 = vmatprep.subr.bf16.mxu0 %v622_v0  ;;  %462 = vmatpush3.bf16.msra.mxu1 %v461_v12  ;;  %v174_v19 = vld [vmem:[#allocation7 + $0x38] sm:$0xff]  ;;  %v258_v22 = vld [vmem:[#allocation8 + $0x8] sm:$0xff]  ;;  %v259_v23 = vld [vmem:[#allocation8 + $0x10] sm:$0xff] }
  0x4f   :  { %463 = vmatprep.subr.bf16.mxu1 %v622_v0  ;;  %v470_v20 = vpack.c.bf16 %v174_v19, %v173_v18  ;;  %v473_v24 = vpack.c.bf16 %v258_v22, %v257_v21  ;;  %v260_v25 = vld [vmem:[#allocation8 + $0x18] sm:$0xff]  ;;  %v261_v27 = vld [vmem:[#allocation8 + $0x20] sm:$0xff]  ;;  %v262_v28 = vld [vmem:[#allocation8 + $0x28] sm:$0xff] }
  0x50   :  { %v476_v26 = vpack.c.bf16 %v260_v25, %v259_v23  ;;  %v479_v29 = vpack.c.bf16 %v262_v28, %v261_v27  ;;  %v376_v30 = vld [vmem:[%s749_s2] ss:$0 sm:$0xff]  ;;  %v263_v35 = vld [vmem:[#allocation8 + $0x30] sm:$0xff] }
  0x51   :  { %459 = vmatpush3.bf16.msra.mxu0 %v458_v11  ;;  %v264_v36 = vld [vmem:[#allocation8 + $0x38] sm:$0xff] }
  0x52   :  { %472 = vmatprep.subr.bf16.mxu0 %v622_v0  ;;  %465 = vmatpush3.bf16.msra.mxu1 %v464_v13  ;;  %v482_v37 = vpack.c.bf16 %v264_v36, %v263_v35  ;;  %v378_v38 = vld [vmem:[%s751_s4] ss:$0 sm:$0xff]  ;;  %s625_s4 = smov [#allocation10]  }
  0x53   :  { %466 = vmatprep.subr.bf16.mxu1 %v622_v0  ;;  %v380_v45 = vld [vmem:[%s753_s6] ss:$0 sm:$0xff]  ;;  %s365_s28 = sshll.u32 %s625_s4, 4  ;;  %s366_s28 = int_to_ptr.vmem [resolvable:$true] %s365_s28 }
  0x54   :  { %414 = vmatmul.mubr.msk.f32.vlgmr.msra.gmra.mrb[0].mxu0 %vm92_vm1, %v80_v16  ;;  %s586_s6 = scalar_lea.vmem %s366_s28, 128  ;;  %p591_p5 = scmp.lt.s32.totalorder %s366_s28, %s366_s28 }
  0x55   :  { %451 = vmatprep.mubr.msk.f32.mxu0 %vm623_vm0, %v624_v1  ;;  %474 = vmatpush3.bf16.msra.mxu0 %v473_v24  ;;  %p587_p4 = scmp.ne.s32.totalorder %s366_s28, %s586_s6  ;;  %p592_p6 = scmp.lt.s32.totalorder %s586_s6, %s586_s6 }
  0x56   :  { %468 = vmatpush3.bf16.msra.mxu1 %v467_v17  ;;  %475 = vmatprep.subr.bf16.mxu0 %v622_v0 }
  0x57   :  { %469 = vmatprep.subr.bf16.mxu1 %v622_v0  ;;  %p593_p7 = por %p592_p6, %p591_p5 }
  0x59   :  { %477 = vmatpush3.bf16.msra.mxu0 %v476_v26  ;;  %p594_p8 = pnand %p593_p7, %p587_p4 }
  0x5a   :  { %471 = vmatpush3.bf16.msra.mxu1 %v470_v20  ;;  %478 = vmatprep.subr.bf16.mxu0 %v622_v0 }
  0x5d   :  { %480 = vmatpush3.bf16.msra.mxu0 %v479_v29 }
  0x5e   :  { %481 = vmatprep.subr.bf16.mxu0 %v622_v0 }
  0x61   :  { %483 = vmatpush3.bf16.msra.mxu0 %v482_v37 }
 0x127   :  { %v162_v31 = vpop.f32.mrb[0].mxu0 }
 0x128   :  { %v163_v32 = vadd.f32 %v376_v30, %v162_v31  ;;  %v415_v33 = vpop.f32.mrb[1].mxu0 }
 0x12a   :  { %v166_v34 = vmax.f32 %v163_v32, 0.0 }
 0x12c   :  { %433 = vmatmul.mubr.msk.f32.vlgmr.msra.gmra.mrb[0].mxu1 %vm182_vm2, %v166_v34 }
 0x1ff   :  { %v252_v39 = vpop.f32.mrb[0].mxu1 }
 0x200   :  { %v253_v40 = vadd.f32 %v378_v38, %v252_v39  ;;  %v434_v41 = vpop.f32.mrb[1].mxu1 }
 0x202   :  { %v256_v42 = vmax.f32 %v253_v40, 0.0 }
 0x204   :  { %452 = vmatmul.mubr.msk.f32.vlgmr.msra.gmra.mrb[2].mxu0 %vm182_vm2, %v256_v42 }
 0x2d7   :  { %v341_v46 = vpop.f32.mrb[2].mxu0 }
 0x2d8   :  { %v342_v47 = vadd.f32 %v380_v45, %v341_v46  ;;  %v453_v48 = vpop.f32.mrb[3].mxu0 }
 0x2da   :  { %v348_v49 = vsel %vm347_vm3, %v342_v47, -inf }
 0x2db   :  { %349 = vmax.xlane.f32.xlu0 %v348_v49 }
 0x368   :  { %v350_v50 = vpop.xlane.xlu0 %349 }
 0x369   :  { %v351_v51 = vsub.f32 %v348_v49, %v350_v50 }
 0x36b   :  { %v352_v52 = vmul.f32 1.442695, %v351_v51 }
 0x36d   :  { %494 = vpow2.f32 %v352_v52 }
 0x377   :  { %v495_v53 = vpop.eup %494 }
 0x378   :  { %354 = vadd.xlane.f32.xlu0 %v495_v53 }
 0x405   :  { %v355_v54 = vpop.xlane.xlu0 %354 }
 0x406   :  { %496 = vrcp.f32 %v355_v54 }
 0x410   :  { %v497_v55 = vpop.eup %496 }
 0x411   :  { %v357_v56 = vmul.f32 %v497_v55, %v495_v53 }
 0x413   :  { %358 = vst [vmem:[#allocation10] sm:$0xff] %v357_v56 }
 0x414   :  { %597 = shalt.err (!%p594_p8)
}
 0x415   :  { %s598_s8 = scalar_lea.hbm %s754_s7, 128 }
 0x416   :  { %p599_p9 = scmp.ne.s32.totalorder %s754_s7, %s598_s8  ;;  %p602_p10 = scmp.lt.u32.totalorder %s598_s8, %s754_s7 }
 0x418   :  { %p604_p11 = pnand %p602_p10, %p599_p9 }
 0x41a   :  { %607 = shalt.err (!%p604_p11)
}
 0x41b   :  { %368 = dma.vmem_to_hbm [thread:$0]  %s366_s28, 128, %s754_s7, [#allocation4]  }
 0x41c   :  { %614 = dma.done.wait [#allocation4], 128  }
 0x41d   :  { %615 = vsyncadd [#allocation4], 4294967168 }
 0x41e   :  { %372 = vsyncpa [#allocation3], 1 }
 0x41f   :  { %373 = vsyncpa [#allocation6], 1 }
 0x420   :  { %374 = vsyncpa [#allocation9], 1 }
 0x421   :  { %375 = vsyncpa [#allocation4], 1 }

</bundles_post_ra>
